<compile_context>
chip_gen: v7x
topology: tpu7x:2x2x1
jax: 0.10.0
libtpu: 0.0.40
codegen_flags: <defaults>
</compile_context>

<pallas_src>
import functools

import jax
import jax.numpy as jnp
from jax.experimental import pallas as pl
from jax.experimental.pallas import tpu as pltpu

NUM_CLASSES = 3
GAMMA = 2.0
SMOOTH = 1e-6
DICE_WEIGHT = 0.7
FOCAL_WEIGHT = 0.3
# Deterministic "parameters" from the module __init__ (alpha defaults).
ALPHA = (0.05, 10.0, 15.0)

_LANES = 128
_DEFAULT_TILE_ROWS = 1024     # 1024*128 px/class/step (~1.5 MiB f32 logits block)


def _tile_kernel(logits_ref, targets_ref, out_ref, *,
                 num_classes, gamma, alpha, tile_rows, valid_rows, out_rows,
                 mask_rows, mask_lanes):
    """Partial focal / dice sums for one (batch, pixel-tile) grid step.

    logits_ref : (1, C, tr, 128) per-class lane-dense pixel planes
    targets_ref: (1, tr, 128)    int32 (-1 marks lane-padded pixels)
    out_ref    : (1, 1, out_rows, 128) f32 partials, one block per step:
                 row 0        : sum of alpha_t * (1-pt)^gamma * ce
                 rows 1..C    : per-class intersection lane-partials
                 rows 1+C..2C : per-class union lane-partials
                 remaining    : zeros
    """
    j = pl.program_id(1)

    tgt = targets_ref[0]                                     # (tr, 128) int32
    xs = [logits_ref[0, c].astype(jnp.float32) for c in range(num_classes)]

    if mask_rows:
        # Ragged last tile: rows past `valid_rows` come from an out-of-bounds
        # boundary block (garbage) -- neutralize before any arithmetic.
        row_ids = jax.lax.broadcasted_iota(jnp.int32, tgt.shape, 0)
        in_bounds = row_ids < (valid_rows - j * tile_rows)
        tgt = jnp.where(in_bounds, tgt, -1)
        xs = [jnp.where(in_bounds, x, 0.0) for x in xs]

    has_padding = mask_rows or mask_lanes
    matches = [(tgt == c).astype(jnp.float32) for c in range(num_classes)]
    if has_padding:
        valid = (tgt >= 0).astype(jnp.float32)

    # Selected logit / alpha and class-max, consuming xs early (live range).
    m = xs[0]
    x_t = matches[0] * xs[0]
    alpha_t = matches[0] * alpha[0]
    for c in range(1, num_classes):
        m = jnp.maximum(m, xs[c])
        x_t = x_t + matches[c] * xs[c]
        alpha_t = alpha_t + matches[c] * alpha[c]

    # Softmax over classes as elementwise ops across C planes (no XLU reduce).
    es = [jnp.exp(x - m) for x in xs]                        # C exps / pixel
    s = es[0]
    for c in range(1, num_classes):
        s = s + es[c]
    # Approx reciprocal (EUP slot, has slack) + one Newton step (~f32 exact).
    r = pl.reciprocal(s, approx=True)
    inv_s = r * (2.0 - s * r)
    log_s = jnp.log(s)                                       # 1 log / pixel

    # Selected softmax prob == exp(-ce): no extra exp.
    e_t = matches[0] * es[0]
    for c in range(1, num_classes):
        e_t = e_t + matches[c] * es[c]
    p_t = e_t * inv_s

    ce = (m + log_s) - x_t                                   # cross-entropy
    one_minus_pt = jnp.maximum(1.0 - p_t, 0.0)
    if gamma == 2.0:
        mod = one_minus_pt * one_minus_pt                    # avoid pow -> log+exp
    else:
        mod = jnp.power(one_minus_pt, gamma)
    focal_px = alpha_t * mod * ce                            # alpha_t == 0 on padding

    parts = [jnp.sum(focal_px, axis=0, keepdims=True)]       # (1, 128)
    # Intersection: softmax prob of the target class equals p_t where tgt == c.
    for c in range(num_classes):
        parts.append(jnp.sum(matches[c] * p_t, axis=0, keepdims=True))
    inv_s_u = inv_s * valid if has_padding else inv_s
    for c in range(num_classes):
        parts.append(jnp.sum(es[c] * inv_s_u + matches[c], axis=0, keepdims=True))
    pad = out_rows - (1 + 2 * num_classes)
    if pad:
        parts.append(jnp.zeros((pad, tgt.shape[1]), jnp.float32))
    # Single unmasked (out_rows, 128) store per grid step (no RMW chain).
    out_ref[0, 0] = jnp.concatenate(parts, axis=0)


def improved_dice_focal_loss(logits_nchw, targets_nhw,
                             alpha=ALPHA, gamma=GAMMA, smooth=SMOOTH,
                             dice_weight=DICE_WEIGHT, focal_weight=FOCAL_WEIGHT,
                             tile_rows=_DEFAULT_TILE_ROWS):
    N, C, H, W = logits_nchw.shape
    HW = H * W
    P = N * HW
    alpha_vals = tuple(float(a) for a in alpha)   # static module parameters
    assert len(alpha_vals) == C

    # Free re-layout (no HBM transpose): NCHW -> (N, C, rows, 128) pixel planes.
    rows = -(-HW // _LANES)
    lane_pad = rows * _LANES - HW

    logits_r = logits_nchw.reshape(N, C, HW)
    targets_r = targets_nhw.reshape(N, HW).astype(jnp.int32)
    if lane_pad:
        # Only unavoidable pad: last dim must be a multiple of 128 lanes.
        logits_r = jnp.pad(logits_r, ((0, 0), (0, 0), (0, lane_pad)))
        targets_r = jnp.pad(targets_r, ((0, 0), (0, lane_pad)),
                            constant_values=-1)
    logits_r = logits_r.reshape(N, C, rows, _LANES)
    targets_r = targets_r.reshape(N, rows, _LANES)

    # Sublane-aligned tile; ragged tail handled in-kernel (no row-pad copy).
    tr = min(int(tile_rows), rows)
    if tr < rows:
        tr = max(8, (tr // 8) * 8)
        tr = min(tr, rows)
    num_tiles = -(-rows // tr)
    mask_rows = (rows % tr) != 0

    out_rows = ((1 + 2 * C + 7) // 8) * 8

    kernel = functools.partial(
        _tile_kernel, num_classes=C, gamma=float(gamma), alpha=alpha_vals,
        tile_rows=tr, valid_rows=rows, out_rows=out_rows,
        mask_rows=mask_rows, mask_lanes=bool(lane_pad))

    # Per-(batch, tile) partial blocks; both grid axes independent so the tile
    # axis (not just batch) can shard across v7x's 2 TensorCores.
    partials = pl.pallas_call(
        kernel,
        out_shape=jax.ShapeDtypeStruct((N, num_tiles, out_rows, _LANES),
                                       jnp.float32),
        grid=(N, num_tiles),
        in_specs=[
            pl.BlockSpec((1, C, tr, _LANES), lambda n, j: (n, 0, j, 0)),
            pl.BlockSpec((1, tr, _LANES), lambda n, j: (n, j, 0)),
        ],
        out_specs=pl.BlockSpec((1, 1, out_rows, _LANES),
                               lambda n, j: (n, j, 0, 0)),
        compiler_params=pltpu.CompilerParams(
            dimension_semantics=("parallel", "parallel"),
            vmem_limit_bytes=32 * 1024 * 1024),
    )(logits_r, targets_r)

    # Tiny epilogue: combine per-(batch, tile, lane) partial sums.
    sums = jnp.sum(partials, axis=(0, 1, 3))                 # (out_rows,)
    focal_mean = sums[0] / float(P)
    inter = sums[1:1 + C]
    union = sums[1 + C:1 + 2 * C]
    alpha_vec = jnp.asarray(alpha_vals, jnp.float32)
    dice_c = jnp.where(union == 0.0,
                       jnp.zeros_like(union),
                       1.0 - (2.0 * inter + smooth) / (union + smooth))
    dice_mean = jnp.mean(alpha_vec * dice_c)
    return focal_weight * focal_mean + dice_weight * dice_mean


def _reference_loss(logits, targets, alpha=ALPHA, gamma=GAMMA, smooth=SMOOTH,
                    dice_weight=DICE_WEIGHT, focal_weight=FOCAL_WEIGHT):
    """Pure-JAX reference matching the PyTorch module."""
    C = logits.shape[1]
    alpha = jnp.asarray(alpha, jnp.float32)
    logp = jax.nn.log_softmax(logits, axis=1)
    ce = -jnp.take_along_axis(logp, targets[:, None], axis=1)[:, 0]  # (N,H,W)
    pt = jnp.exp(-ce)
    focal = (alpha[targets] * jnp.power(jnp.maximum(1.0 - pt, 0.0), gamma)
             * ce).mean()
    probs = jax.nn.softmax(logits, axis=1)
    oh = jax.nn.one_hot(targets, C, dtype=jnp.float32).transpose(0, 3, 1, 2)
    inter = (probs * oh).sum(axis=(0, 2, 3))
    union = probs.sum(axis=(0, 2, 3)) + oh.sum(axis=(0, 2, 3))
    dice = jnp.where(union == 0.0, 0.0,
                     1.0 - (2.0 * inter + smooth) / (union + smooth))
    return focal_weight * focal + dice_weight * (alpha * dice).mean()


if __name__ == "__main__":
    key = jax.random.PRNGKey(0)
    k1, k2, k3, k4 = jax.random.split(key, 4)

    # Case 1: lane-aligned shapes (no padding / masking path).
    N, C, H, W = 2, NUM_CLASSES, 16, 16
    logits = jax.random.normal(k1, (N, C, H, W), dtype=jnp.float32)
    targets = jax.random.randint(k2, (N, H, W), 0, C, dtype=jnp.int32)
    loss = jax.block_until_ready(improved_dice_focal_loss(logits, targets))
    ref = _reference_loss(logits, targets)
    assert jnp.allclose(loss, ref, rtol=1e-4, atol=1e-5), (loss, ref)

    # Case 2: lane padding + ragged last row-tile (in-kernel masking path).
    N2, H2, W2 = 1, 40, 40
    logits2 = jax.random.normal(k3, (N2, C, H2, W2), dtype=jnp.float32)
    targets2 = jax.random.randint(k4, (N2, H2, W2), 0, C, dtype=jnp.int32)
    loss2 = jax.block_until_ready(
        improved_dice_focal_loss(logits2, targets2, tile_rows=8))
    ref2 = _reference_loss(logits2, targets2)
    assert jnp.allclose(loss2, ref2, rtol=1e-4, atol=1e-5), (loss2, ref2)

    print("KERNEL_OK")
</pallas_src>

<mosaic_0001>
module attributes {stable_mosaic.version = 11 : i64} {
  func.func @_tile_kernel(%arg0: i32, %arg1: i32, %arg2: memref<1x3x2x128xf32, #tpu.memory_space<vmem>>, %arg3: memref<1x2x128xi32, #tpu.memory_space<vmem>>, %arg4: memref<1x1x8x128xf32, #tpu.memory_space<vmem>>) attributes {dimension_semantics = [#tpu.dimension_semantics<parallel>, #tpu.dimension_semantics<parallel>], iteration_bounds = array<i64: 2, 1>, scalar_prefetch = 0 : i64, scratch_operands = 0 : i64, tpu.core_type = #tpu.core_type<tc>, window_params = [{transform_indices = @transform_0, window_bounds = array<i64: 1, 3, 2, 128>}, {transform_indices = @transform_1, window_bounds = array<i64: 1, 2, 128>}, {transform_indices = @transform_2, window_bounds = array<i64: 1, 1, 8, 128>}]} {
    %c0 = arith.constant 0 : index
    %c0_0 = arith.constant 0 : index
    %c0_1 = arith.constant 0 : index
    %0 = vector.load %arg3[%c0, %c0_0, %c0_1] : memref<1x2x128xi32, #tpu.memory_space<vmem>>, vector<1x2x128xi32>
    %1 = vector.shape_cast %0 : vector<1x2x128xi32> to vector<2x128xi32>
    %c0_2 = arith.constant 0 : index
    %c0_3 = arith.constant 0 : index
    %c0_4 = arith.constant 0 : index
    %c0_5 = arith.constant 0 : index
    %2 = vector.load %arg2[%c0_2, %c0_3, %c0_4, %c0_5] : memref<1x3x2x128xf32, #tpu.memory_space<vmem>>, vector<1x1x2x128xf32>
    %3 = vector.shape_cast %2 : vector<1x1x2x128xf32> to vector<2x128xf32>
    %c0_6 = arith.constant 0 : index
    %c1 = arith.constant 1 : index
    %c0_7 = arith.constant 0 : index
    %c0_8 = arith.constant 0 : index
    %4 = vector.load %arg2[%c0_6, %c1, %c0_7, %c0_8] : memref<1x3x2x128xf32, #tpu.memory_space<vmem>>, vector<1x1x2x128xf32>
    %5 = vector.shape_cast %4 : vector<1x1x2x128xf32> to vector<2x128xf32>
    %c0_9 = arith.constant 0 : index
    %c2 = arith.constant 2 : index
    %c0_10 = arith.constant 0 : index
    %c0_11 = arith.constant 0 : index
    %6 = vector.load %arg2[%c0_9, %c2, %c0_10, %c0_11] : memref<1x3x2x128xf32, #tpu.memory_space<vmem>>, vector<1x1x2x128xf32>
    %7 = vector.shape_cast %6 : vector<1x1x2x128xf32> to vector<2x128xf32>
    %c0_i32 = arith.constant 0 : i32
    %8 = vector.broadcast %c0_i32 : i32 to vector<2x128xi32>
    %9 = arith.cmpi eq, %1, %8 : vector<2x128xi32>
    %10 = arith.extui %9 : vector<2x128xi1> to vector<2x128xi32>
    %11 = arith.sitofp %10 : vector<2x128xi32> to vector<2x128xf32>
    %c1_i32 = arith.constant 1 : i32
    %12 = vector.broadcast %c1_i32 : i32 to vector<2x128xi32>
    %13 = arith.cmpi eq, %1, %12 : vector<2x128xi32>
    %14 = arith.extui %13 : vector<2x128xi1> to vector<2x128xi32>
    %15 = arith.sitofp %14 : vector<2x128xi32> to vector<2x128xf32>
    %c2_i32 = arith.constant 2 : i32
    %16 = vector.broadcast %c2_i32 : i32 to vector<2x128xi32>
    %17 = arith.cmpi eq, %1, %16 : vector<2x128xi32>
    %18 = arith.extui %17 : vector<2x128xi1> to vector<2x128xi32>
    %19 = arith.sitofp %18 : vector<2x128xi32> to vector<2x128xf32>
    %20 = arith.mulf %11, %3 : vector<2x128xf32>
    %cst = arith.constant 5.000000e-02 : f32
    %21 = vector.broadcast %cst : f32 to vector<2x128xf32>
    %22 = arith.mulf %11, %21 : vector<2x128xf32>
    %23 = arith.maximumf %3, %5 : vector<2x128xf32>
    %24 = arith.mulf %15, %5 : vector<2x128xf32>
    %25 = arith.addf %20, %24 : vector<2x128xf32>
    %cst_12 = arith.constant 1.000000e+01 : f32
    %26 = vector.broadcast %cst_12 : f32 to vector<2x128xf32>
    %27 = arith.mulf %15, %26 : vector<2x128xf32>
    %28 = arith.addf %22, %27 : vector<2x128xf32>
    %29 = arith.maximumf %23, %7 : vector<2x128xf32>
    %30 = arith.mulf %19, %7 : vector<2x128xf32>
    %31 = arith.addf %25, %30 : vector<2x128xf32>
    %cst_13 = arith.constant 1.500000e+01 : f32
    %32 = vector.broadcast %cst_13 : f32 to vector<2x128xf32>
    %33 = arith.mulf %19, %32 : vector<2x128xf32>
    %34 = arith.addf %28, %33 : vector<2x128xf32>
    %35 = arith.subf %3, %29 : vector<2x128xf32>
    %36 = math.exp %35 : vector<2x128xf32>
    %37 = arith.subf %5, %29 : vector<2x128xf32>
    %38 = math.exp %37 : vector<2x128xf32>
    %39 = arith.subf %7, %29 : vector<2x128xf32>
    %40 = math.exp %39 : vector<2x128xf32>
    %41 = arith.addf %36, %38 : vector<2x128xf32>
    %42 = arith.addf %41, %40 : vector<2x128xf32>
    %43 = tpu.reciprocal %42 {approx = true} : vector<2x128xf32> -> vector<2x128xf32>
    %44 = arith.mulf %42, %43 : vector<2x128xf32>
    %cst_14 = arith.constant 2.000000e+00 : f32
    %45 = vector.broadcast %cst_14 : f32 to vector<2x128xf32>
    %46 = arith.subf %45, %44 : vector<2x128xf32>
    %47 = arith.mulf %43, %46 : vector<2x128xf32>
    %48 = math.log %42 : vector<2x128xf32>
    %49 = arith.mulf %11, %36 : vector<2x128xf32>
    %50 = arith.mulf %15, %38 : vector<2x128xf32>
    %51 = arith.addf %49, %50 : vector<2x128xf32>
    %52 = arith.mulf %19, %40 : vector<2x128xf32>
    %53 = arith.addf %51, %52 : vector<2x128xf32>
    %54 = arith.mulf %53, %47 : vector<2x128xf32>
    %55 = arith.addf %29, %48 : vector<2x128xf32>
    %56 = arith.subf %55, %31 : vector<2x128xf32>
    %cst_15 = arith.constant 1.000000e+00 : f32
    %57 = vector.broadcast %cst_15 : f32 to vector<2x128xf32>
    %58 = arith.subf %57, %54 : vector<2x128xf32>
    %cst_16 = arith.constant 0.000000e+00 : f32
    %59 = vector.broadcast %cst_16 : f32 to vector<2x128xf32>
    %60 = arith.maximumf %58, %59 : vector<2x128xf32>
    %61 = arith.mulf %60, %60 : vector<2x128xf32>
    %62 = arith.mulf %34, %61 : vector<2x128xf32>
    %63 = arith.mulf %62, %56 : vector<2x128xf32>
    %cst_17 = arith.constant dense<0.000000e+00> : vector<128xf32>
    %64 = vector.multi_reduction <add>, %63, %cst_17 [0] : vector<2x128xf32> to vector<128xf32>
    %65 = vector.shape_cast %64 : vector<128xf32> to vector<1x128xf32>
    %66 = arith.mulf %11, %54 : vector<2x128xf32>
    %cst_18 = arith.constant dense<0.000000e+00> : vector<128xf32>
    %67 = vector.multi_reduction <add>, %66, %cst_18 [0] : vector<2x128xf32> to vector<128xf32>
    %68 = vector.shape_cast %67 : vector<128xf32> to vector<1x128xf32>
    %69 = arith.mulf %15, %54 : vector<2x128xf32>
    %cst_19 = arith.constant dense<0.000000e+00> : vector<128xf32>
    %70 = vector.multi_reduction <add>, %69, %cst_19 [0] : vector<2x128xf32> to vector<128xf32>
    %71 = vector.shape_cast %70 : vector<128xf32> to vector<1x128xf32>
    %72 = arith.mulf %19, %54 : vector<2x128xf32>
    %cst_20 = arith.constant dense<0.000000e+00> : vector<128xf32>
    %73 = vector.multi_reduction <add>, %72, %cst_20 [0] : vector<2x128xf32> to vector<128xf32>
    %74 = vector.shape_cast %73 : vector<128xf32> to vector<1x128xf32>
    %75 = arith.mulf %36, %47 : vector<2x128xf32>
    %76 = arith.addf %75, %11 : vector<2x128xf32>
    %cst_21 = arith.constant dense<0.000000e+00> : vector<128xf32>
    %77 = vector.multi_reduction <add>, %76, %cst_21 [0] : vector<2x128xf32> to vector<128xf32>
    %78 = vector.shape_cast %77 : vector<128xf32> to vector<1x128xf32>
    %79 = arith.mulf %38, %47 : vector<2x128xf32>
    %80 = arith.addf %79, %15 : vector<2x128xf32>
    %cst_22 = arith.constant dense<0.000000e+00> : vector<128xf32>
    %81 = vector.multi_reduction <add>, %80, %cst_22 [0] : vector<2x128xf32> to vector<128xf32>
    %82 = vector.shape_cast %81 : vector<128xf32> to vector<1x128xf32>
    %83 = arith.mulf %40, %47 : vector<2x128xf32>
    %84 = arith.addf %83, %19 : vector<2x128xf32>
    %cst_23 = arith.constant dense<0.000000e+00> : vector<128xf32>
    %85 = vector.multi_reduction <add>, %84, %cst_23 [0] : vector<2x128xf32> to vector<128xf32>
    %86 = vector.shape_cast %85 : vector<128xf32> to vector<1x128xf32>
    %cst_24 = arith.constant 0.000000e+00 : f32
    %87 = vector.broadcast %cst_24 : f32 to vector<1x128xf32>
    %88 = tpu.concatenate %65, %68, %71, %74, %78, %82, %86, %87 in 0 : vector<1x128xf32>, vector<1x128xf32>, vector<1x128xf32>, vector<1x128xf32>, vector<1x128xf32>, vector<1x128xf32>, vector<1x128xf32>, vector<1x128xf32> -> vector<8x128xf32>
    %c0_25 = arith.constant 0 : index
    %c0_26 = arith.constant 0 : index
    %c0_27 = arith.constant 0 : index
    %c0_28 = arith.constant 0 : index
    %89 = vector.load %arg4[%c0_25, %c0_26, %c0_27, %c0_28] : memref<1x1x8x128xf32, #tpu.memory_space<vmem>>, vector<1x1x8x128xf32>
    %90 = vector.shape_cast %89 : vector<1x1x8x128xf32> to vector<8x128xf32>
    %91 = vector.shape_cast %88 : vector<8x128xf32> to vector<1x1x8x128xf32>
    tpu.vector_store %arg4[%c0_25, %c0_26, %c0_27, %c0_28], %91 {strides = array<i32>} : memref<1x1x8x128xf32, #tpu.memory_space<vmem>>, vector<1x1x8x128xf32>,
    return
  }
  func.func @transform_0(%arg0: i32, %arg1: i32) -> (i32, i32, i32, i32) {
    %c0_i32 = arith.constant 0 : i32
    %c0_i32_0 = arith.constant 0 : i32
    %c0_i32_1 = arith.constant 0 : i32
    return %arg0, %c0_i32, %arg1, %c0_i32_0 : i32, i32, i32, i32
  }
  func.func @transform_1(%arg0: i32, %arg1: i32) -> (i32, i32, i32) {
    %c0_i32 = arith.constant 0 : i32
    %c0_i32_0 = arith.constant 0 : i32
    return %arg0, %arg1, %c0_i32 : i32, i32, i32
  }
  func.func @transform_2(%arg0: i32, %arg1: i32) -> (i32, i32, i32, i32) {
    %c0_i32 = arith.constant 0 : i32
    %c0_i32_0 = arith.constant 0 : i32
    %c0_i32_1 = arith.constant 0 : i32
    return %arg0, %arg1, %c0_i32, %c0_i32_0 : i32, i32, i32, i32
  }
}

</mosaic_0001>

<bundles_post_ra>
// kernel: tpu_custom_call.1
= control target key start
LH: loop header
LB: loop body
LE: loop exit
PB: predicated region body
PF: predicated region fallthrough
CT: control target
= control target key end

     0   :  { %7 = vsyncpa [#allocation3], 0  ;;  %s964_s0 = inlined_call_operand.hbm [shape: f32[2,3,2,128], index: 0, kind: input, shape index: {}]   ;;  %s965_s1 = inlined_call_operand.hbm [shape: s32[2,2,128], index: 1, kind: input, shape index: {}]   ;;  %s966_s2 = inlined_call_operand.hbm [shape: f32[2,1,8,128], index: 2, kind: output, shape index: {}]  }
   0x1   :  { %9 = vsyncpa [#allocation3 + $0x1], 0 }
   0x2   :  { %10 = vsyncpa [#allocation6], 0 }
   0x3   :  { %12 = vsyncpa [#allocation6 + $0x1], 0 }
   0x4   :  { %13 = vsyncpa [#allocation4], 0 }
   0x5   :  { %15 = vsyncpa [#allocation4 + $0x1], 0  ;;  %s740_s9 = smov 0   ;;  %s742_s10 = smov 0  }
   0x6   :  { %s744_s11 = smov 0   ;;  %s746_s12 = smov 0  }
   0x7   :  { %s748_s13 = smov 0   ;;  %s750_s14 = smov 0  }
   0x8 LB: > { %s469_s15 = sadd.s32 4294967295, %s717_s14   ;;  %s470_s16 = sadd.s32 4294967294, %s717_s14   ;;  %s717_s14 = sphi %s750_s14, %s21_s14   ;;  %s713_s13 = sphi %s748_s13, %s985_s13   ;;  %s709_s12 = sphi %s746_s12, %s984_s12   ;;  %s705_s11 = sphi %s744_s11, %s983_s11   ;;  %s701_s10 = sphi %s742_s10, %s982_s10   ;;  %s697_s9 = sphi %s740_s9, %s981_s9  }
   0x9   : > { %s33_s17 = sadd.s32 1, %s713_s13  ;;  %s42_s18 = sadd.s32 1, %s705_s11 }
   0xa   : > { %p35_p0 = scmp.ge.s32.totalorder %s33_s17, 2  ;;  %p49_p1 = scmp.ne.s32.totalorder %s705_s11, %s701_s10 }
   0xb   : > { %p50_p2 = scmp.eq.s32.totalorder %s717_s14, 0  ;;  %p55_p3 = scmp.ne.s32.totalorder %s701_s10, %s697_s9 }
   0xc   : > { %s987_s17 = smov (%p35_p0, %s33_s17), 0  ;;  %p56_p5 = scmp.eq.s32.totalorder %s469_s15, 0 }
   0xd   : > { %p781_p4 = por %p50_p2, %p49_p1  ;;  %s37_s20 = ssub.s32 %s713_s13, %s987_s17 }
   0xe   : > { %p109_p6 = scmp.eq.s32.totalorder %s469_s15, 1  ;;  %p40_p7 = scmp.eq.s32.totalorder %s37_s20, 0 }
   0xf   : > { %p787_p8 = por %p56_p5, %p55_p3  ;;  %p115_p10 = scmp.eq.s32.totalorder %s470_s16, 1 }
  0x10   : > { %p791_p9 = por %p109_p6, %p49_p1  ;;  %p508_p13 = scmp.lt.s32.totalorder %s717_s14, 2 }
  0x11   : > { %s970_s21 = scalar_select %p787_p8, 1, 0 }
  0x12   : > { %s971_s22 = scalar_select %p791_p9, 1, 0 }
  0x13   : > { %s796_s23 = scalar_select %p40_p7, %s705_s11, %s42_s18  }
  0x14   : > { %p798_p11 = por %p115_p10, %p55_p3  ;;  %s805_s25 = sand.u32 1, %s705_s11  }
  0x15   : > { %s488_s26 = smul.u32 6, %s805_s25  ;;  %p811_p0 = pnand %p508_p13, %p781_p4 }
  0x16   : > { %s972_s24 = scalar_select %p798_p11, 1, 0 }
  0x17   : > { %s489_s27 = smul.u32 96, %s713_s13  ;;  %s139_s4 = scalar_lea.vmem [#allocation2], %s488_s26 }
  0x18   : > { %s147_s5 = sshll.u32 %s139_s4, 4  ;;  %s136_s6 = scalar_lea.sflag [#allocation3], %s805_s25  ;;  %s820_s5 = int_to_ptr.vmem [resolvable:$true] %s147_s5 }
  0x19   : > { %s818_s3 = scalar_lea.hbm %s964_s0, %s489_s27  ;;  %p573_p3 = pneg %p811_p0 }
  0x1a   : > { %s571_s7 = scalar_lea.hbm %s818_s3, 96  ;;  %s576_s16 = scalar_lea.hbm %s964_s0, 192 }
  0x1b   : > { %p572_p2 = scmp.ne.s32.totalorder %s818_s3, %s571_s7  ;;  %p577_p6 = scmp.lt.u32.totalorder %s818_s3, %s964_s0 }
  0x1c   : > { %p578_p7 = scmp.lt.u32.totalorder %s576_s16, %s571_s7  ;;  %p580_p13 = scmp.lt.u32.totalorder %s571_s7, %s818_s3 }
  0x1d   : > { %p574_p4 = pnand %p573_p3, %p572_p2 }
  0x1e   : > { %p579_p10 = por %p578_p7, %p577_p6 }
  0x1f   : > { %p575_p5 = pneg %p574_p4 }
  0x20   : > { %p581_p12 = por %p580_p13, %p579_p10 }
  0x22   : > { %p582_p1 = pnand %p581_p12, %p575_p5 }
  0x24   : > { %585 = shalt.err (!%p582_p1)
}
  0x25   : > { %s586_s20 = scalar_lea.vmem %s820_s5, 96  ;;  %s719_s26 = smov [#allocation2]  }
  0x26   : > { %p587_p2 = scmp.ne.s32.totalorder %s820_s5, %s586_s20  ;;  %s591_s27 = sshll.u32 %s719_s26, 4  ;;  %s592_s27 = int_to_ptr.vmem [resolvable:$false] %s591_s27 }
  0x27   : > { %s593_s29 = scalar_lea.vmem %s592_s27, 192  ;;  %p594_p9 = scmp.lt.s32.totalorder %s820_s5, %s592_s27 }
  0x28   : > { %p589_p4 = pnand %p587_p2, %p573_p3  ;;  %p595_p6 = scmp.lt.s32.totalorder %s593_s29, %s586_s20 }
  0x2a   : > { %p590_p11 = pneg %p589_p4  ;;  %p596_p7 = por %p595_p6, %p594_p9 }
  0x2c   : > { %p597_p10 = pnand %p596_p7, %p590_p11 }
  0x2e   : > { %600 = shalt.err (!%p597_p10)
}
  0x2f   : > { %s720_s30 = smov 32   ;;  %s721_s4 = smov 2  }
  0x30   : > { %500 = dma.hbm_to_vmem [thread:$0]  (!%p811_p0), %s818_s3, 96, %s820_s5, %s136_s6, %s720_s30, %s720_s30, %s721_s4  }
  0x31   : > { %p174_p12 = scmp.lt.s32.totalorder %s717_s14, 3  ;;  %s474_s7 = sshll.u32 %s805_s25, 1 }
  0x32   : > { %s475_s8 = sshll.u32 %s713_s13, 5  ;;  %p974_p9 = scmp.ge.s32.totalorder %s717_s14, 1 }
  0x33   : > { %s863_s19 = scalar_lea.hbm %s965_s1, %s475_s8  ;;  %s161_s20 = scalar_lea.vmem [#allocation5], %s474_s7 }
  0x34   : > { %p856_p11 = pnand %p974_p9, %p174_p12  ;;  %s169_s26 = sshll.u32 %s161_s20, 4  ;;  %s170_s26 = int_to_ptr.vmem [resolvable:$true] %s169_s26 }
  0x35   : > { %s158_s3 = scalar_lea.sflag [#allocation6], %s805_s25  ;;  %s601_s5 = scalar_lea.hbm %s863_s19, 32 }
  0x36   : > { %s975_s15 = scalar_select %p856_p11, 1, 0 }
  0x37   : > { %p602_p1 = scmp.ne.s32.totalorder %s863_s19, %s601_s5  ;;  %s606_s29 = scalar_lea.hbm %s965_s1, 64 }
  0x38   : > { %p607_p2 = scmp.lt.u32.totalorder %s863_s19, %s965_s1  ;;  %p608_p4 = scmp.lt.u32.totalorder %s606_s29, %s601_s5 }
  0x39   : > { %p604_p5 = pnand %p602_p1, %p573_p3  ;;  %p610_p7 = scmp.lt.u32.totalorder %s601_s5, %s863_s19 }
  0x3a   : > { %p609_p6 = por %p608_p4, %p607_p2 }
  0x3b   : > { %p605_p13 = pneg %p604_p5 }
  0x3c   : > { %p611_p10 = por %p610_p7, %p609_p6 }
  0x3e   : > { %p612_p12 = pnand %p611_p10, %p605_p13 }
  0x40   : > { %615 = shalt.err (!%p612_p12)
}
  0x41   : > { %s616_s25 = scalar_lea.vmem %s170_s26, 32  ;;  %s722_s7 = smov [#allocation5]  }
  0x42   : > { %p617_p9 = scmp.ne.s32.totalorder %s170_s26, %s616_s25  ;;  %s621_s8 = sshll.u32 %s722_s7, 4  ;;  %s622_s8 = int_to_ptr.vmem [resolvable:$false] %s621_s8 }
  0x43   : > { %s623_s16 = scalar_lea.vmem %s622_s8, 64  ;;  %p624_p8 = scmp.lt.s32.totalorder %s170_s26, %s622_s8 }
  0x44   : > { %p619_p1 = pnand %p617_p9, %p573_p3  ;;  %p625_p11 = scmp.lt.s32.totalorder %s623_s16, %s616_s25 }
  0x46   : > { %p620_p5 = pneg %p619_p1  ;;  %p626_p2 = por %p625_p11, %p624_p8 }
  0x48   : > { %p627_p4 = pnand %p626_p2, %p620_p5 }
  0x4a   : > { %630 = shalt.err (!%p627_p4)
}
  0x4b   : > { %503 = dma.hbm_to_vmem [thread:$0]  (!%p811_p0), %s863_s19, 32, %s170_s26, %s158_s3  }
  0x4c   : > { %p976_p13 = scmp.ne.s32.totalorder %s975_s15, 0 }
  0x4d   : > { %s888_s18 = sand.u32 (!%p976_p13), 1, %s701_s10   ;;  %p977_p3 = scmp.ne.s32.totalorder (!%p976_p13), %s970_s21, 0 }
  0x4e   : > { %178 = sbr.rel (%p976_p13) target bundleno = 177 (0xb1), region = 28  ;;  %s181_s5 = scalar_lea.sflag (!%p976_p13), [#allocation3], %s888_s18 }
  0x4f   : > { %s490_s20 = smul.u32 (!%p976_p13), 6, %s888_s18 }
  0x51   : > { %s184_s6 = scalar_lea.vmem (!%p976_p13), [#allocation2], %s490_s20 }
  0x55   : > { %684 = dma.done.wait (%p977_p3), %s181_s5, 96  }
  0x56   : > { %686 = vsyncadd (%p977_p3), %s181_s5, 4294967200  ;;  %s477_s28 = sshll.u32 %s888_s18, 1  ;;  %s190_s15 = scalar_lea.sflag [#allocation6], %s888_s18 }
  0x57   : > { %s193_s19 = scalar_lea.vmem [#allocation5], %s477_s28 }
  0x58   : > { %688 = dma.done.wait (%p977_p3), %s190_s15, 32  }
  0x59   : > { %690 = vsyncadd (%p977_p3), %s190_s15, 4294967264  ;;  %v220_v0 = vld [vmem:[%s184_s6] sm:$0x3]  ;;  %v479_v1 = vld [vmem:[%s184_s6 + $0x2] sm:$0x3]  ;;  %v723_v17 = vmov 0.0  }
  0x5a   : > { %v480_v2 = vld [vmem:[%s184_s6 + $0x4] sm:$0x3]  ;;  %v236_v3 = vmax.f32 %v220_v0, %v479_v1  ;;  %v219_v14 = vld [vmem:[%s193_s19] sm:$0x3]  ;;  %vm276_vm3 = vcmask 1041408   ;;  %s478_s21 = sshll.u32 %s888_s18, 3 }
  0x5b   : > { %vm225_vm0 = vcmp.eq.s32.totalorder %v219_v14, 0  ;;  %vm228_vm1 = vcmp.eq.s32.totalorder %v219_v14, 1  ;;  %vm231_vm2 = vcmp.eq.s32.totalorder %v219_v14, 2  ;;  %vm335_vm4 = vcmask 1040384   ;;  %s218_s26 = scalar_lea.vmem [#allocation7], %s478_s21  ;;  %s485_s27 = sshll.u32 %s709_s12, 7 }
  0x5c   : > { %v241_v4 = vmax.f32 %v236_v3, %v480_v2  ;;  %v481_v18 = vsel %vm225_vm0, 1.0, %v723_v17  ;;  %v482_v19 = vsel %vm228_vm1, 1.0, %v723_v17  ;;  %v483_v22 = vsel %vm231_vm2, 1.0, %v723_v17  ;;  %s364_s3 = sshll.u32 %s218_s26, 4  ;;  %s917_s4 = scalar_lea.hbm %s966_s2, %s485_s27  ;;  %s912_s3 = int_to_ptr.vmem [resolvable:$true] %s364_s3 }
  0x5d   : > { %v234_v23 = vmul.f32 %v481_v18, %v220_v0  ;;  %v237_v24 = vmul.f32 %v482_v19, %v479_v1  ;;  %v235_v28 = vmul.f32 0.05, %v481_v18  ;;  %v239_v29 = vmul.f32 10.0, %v482_v19  ;;  %s350_s25 = scalar_lea.sflag [#allocation4], %s888_s18  ;;  %s631_s7 = scalar_lea.vmem %s912_s3, 128 }
  0x5e   : > { %v246_v5 = vsub.f32 %v220_v0, %v241_v4  ;;  %v249_v6 = vsub.f32 %v479_v1, %v241_v4  ;;  %v252_v7 = vsub.f32 %v480_v2, %v241_v4  ;;  %v242_v33 = vmul.f32 %v483_v22, %v480_v2  ;;  %p632_p8 = scmp.ne.s32.totalorder %s912_s3, %s631_s7  ;;  %p978_p0 = scmp.ne.s32.totalorder %s971_s22, 0 }
  0x5f   : > { %v238_v32 = vadd.f32 %v237_v24, %v234_v23  ;;  %v240_v37 = vadd.f32 %v239_v29, %v235_v28  ;;  %v244_v38 = vmul.f32 15.0, %v483_v22  ;;  %vm338_vm5 = vcmask 1042432   ;;  %s724_s12 = smov [#allocation7]  }
  0x60   : > { %v247_v8 = vmul.f32 1.442695, %v246_v5  ;;  %v250_v9 = vmul.f32 1.442695, %v249_v6  ;;  %v253_v10 = vmul.f32 1.442695, %v252_v7  ;;  %p633_p11 = pnand %p632_p8, %p978_p0 }
  0x61   : > { %v243_v40 = vadd.f32 %v242_v33, %v238_v32  ;;  %v245_v46 = vadd.f32 %v244_v38, %v240_v37  ;;  %vm340_vm6 = vcmask 1043456   ;;  %vm342_vm7 = vcmask 1044480   ;;  %s635_s8 = sshll.u32 %s724_s12, 4  ;;  %s636_s8 = int_to_ptr.vmem [resolvable:$false] %s635_s8 }
  0x62   : > { %561 = vpow2.f32 %v247_v8  ;;  %vm344_vm8 = vcmask 1045504   ;;  %vm346_vm9 = vcmask 1046528   ;;  %p634_p6 = pneg %p633_p11  ;;  %s637_s16 = scalar_lea.vmem %s636_s8, 256 }
  0x63   : > { %563 = vpow2.f32 %v250_v9  ;;  %p638_p7 = scmp.lt.s32.totalorder %s912_s3, %s636_s8  ;;  %p639_p10 = scmp.lt.s32.totalorder %s637_s16, %s631_s7 }
  0x64   : > { %565 = vpow2.f32 %v253_v10 }
  0x65   : > { %p640_p12 = por %p639_p10, %p638_p7 }
  0x67   : > { %p641_p9 = pnand %p640_p12, %p634_p6 }
  0x6c   : > { %v562_v11 = vpop.eup %561 }
  0x6d   : > { %v564_v12 = vpop.eup %563  ;;  %v263_v20 = vmul.f32 %v562_v11, %v481_v18 }
  0x6e   : > { %v566_v13 = vpop.eup %565  ;;  %v255_v15 = vadd.f32 %v564_v12, %v562_v11  ;;  %v264_v21 = vmul.f32 %v564_v12, %v482_v19 }
  0x6f   : > { %v266_v26 = vmul.f32 %v566_v13, %v483_v22 }
  0x70   : > { %v256_v16 = vadd.f32 %v566_v13, %v255_v15  ;;  %v265_v25 = vadd.f32 %v264_v21, %v263_v20 }
  0x72   : > { %567 = vrcp.f32 %v256_v16  ;;  %v267_v36 = vadd.f32 %v266_v26, %v265_v25 }
  0x73   : > { %569 = vlog2.f32 %v256_v16 }
  0x7c   : > { %v568_v27 = vpop.eup %567 }
  0x7d   : > { %v570_v30 = vpop.eup %569  ;;  %v258_v31 = vmul.f32 %v568_v27, %v256_v16 }
  0x7e   : > { %v262_v34 = vmul.f32 0.6931472, %v570_v30 }
  0x7f   : > { %v259_v35 = vsub.f32 2.0, %v258_v31 }
  0x80   : > { %v269_v41 = vadd.f32 %v262_v34, %v241_v4 }
  0x81   : > { %v260_v39 = vmul.f32 %v568_v27, %v259_v35 }
  0x82   : > { %v270_v51 = vsub.f32 %v269_v41, %v243_v40 }
  0x83   : > { %v268_v42 = vmul.f32 %v267_v36, %v260_v39  ;;  %v308_v43 = vmul.f32 %v562_v11, %v260_v39  ;;  %v317_v44 = vmul.f32 %v564_v12, %v260_v39  ;;  %v326_v45 = vmul.f32 %v566_v13, %v260_v39 }
  0x85   : > { %v271_v47 = vsub.f32 1.0, %v268_v42  ;;  %v284_v48 = vmul.f32 %v481_v18, %v268_v42  ;;  %v292_v49 = vmul.f32 %v482_v19, %v268_v42  ;;  %v300_v50 = vmul.f32 %v483_v22, %v268_v42 }
  0x86   : > { %v309_v52 = vadd.f32 %v481_v18, %v308_v43  ;;  %v318_v53 = vadd.f32 %v482_v19, %v317_v44  ;;  %v327_v54 = vadd.f32 %v483_v22, %v326_v45 }
  0x87   : > { %v272_v55 = vmax.f32 %v271_v47, 0.0  ;;  %v285_v56 = vsel %vm276_vm3, %v284_v48, 0.0  ;;  %v293_v57 = vsel %vm276_vm3, %v292_v49, 0.0  ;;  %v301_v58 = vsel %vm276_vm3, %v300_v50, 0.0 }
  0x88   : > { %v286_v59 = vrot.slane %v285_v56, 4  ;;  %v294_v60 = vrot.slane %v293_v57, 4  ;;  %v302_v61 = vrot.slane %v301_v58, 4  ;;  %v310_v62 = vsel %vm276_vm3, %v309_v52, 0.0 }
  0x89   : > { %v273_v63 = vmul.f32 %v272_v55, %v272_v55  ;;  %v311_v0 = vrot.slane %v310_v62, 4  ;;  %v319_v1 = vsel %vm276_vm3, %v318_v53, 0.0  ;;  %v328_v2 = vsel %vm276_vm3, %v327_v54, 0.0 }
  0x8a   : > { %v287_v3 = vadd.f32 %v286_v59, %v285_v56  ;;  %v295_v4 = vadd.f32 %v294_v60, %v293_v57  ;;  %v303_v5 = vadd.f32 %v302_v61, %v301_v58  ;;  %v320_v6 = vrot.slane %v319_v1, 4 }
  0x8b   : > { %v274_v7 = vmul.f32 %v273_v63, %v245_v46  ;;  %v312_v8 = vadd.f32 %v311_v0, %v310_v62  ;;  %v329_v9 = vrot.slane %v328_v2, 4 }
  0x8c   : > { %v288_v10 = vrot.slane %v287_v3, 2  ;;  %v321_v11 = vadd.f32 %v320_v6, %v319_v1  ;;  %v296_v13 = vrot.slane %v295_v4, 2  ;;  %v304_v15 = vrot.slane %v303_v5, 2 }
  0x8d   : > { %v275_v12 = vmul.f32 %v274_v7, %v270_v51  ;;  %v330_v14 = vadd.f32 %v329_v9, %v328_v2  ;;  %v313_v17 = vrot.slane %v312_v8, 2 }
  0x8e   : > { %v289_v19 = vadd.f32 %v288_v10, %v287_v3  ;;  %v322_v20 = vrot.slane %v321_v11, 2  ;;  %v297_v21 = vadd.f32 %v296_v13, %v295_v4  ;;  %v305_v24 = vadd.f32 %v304_v15, %v303_v5 }
  0x8f   : > { %v277_v16 = vsel %vm276_vm3, %v275_v12, 0.0  ;;  %v331_v22 = vrot.slane %v330_v14, 2  ;;  %v314_v25 = vadd.f32 %v313_v17, %v312_v8 }
  0x90   : > { %v278_v18 = vrot.slane %v277_v16, 4  ;;  %v290_v27 = vrot.slane %v289_v19, 1  ;;  %v323_v28 = vadd.f32 %v322_v20, %v321_v11  ;;  %v298_v29 = vrot.slane %v297_v21, 1 }
  0x91   : > { %v332_v30 = vadd.f32 %v331_v22, %v330_v14  ;;  %v306_v32 = vrot.slane %v305_v24, 1  ;;  %v315_v33 = vrot.slane %v314_v25, 1 }
  0x92   : > { %v279_v23 = vadd.f32 %v278_v18, %v277_v16  ;;  %v291_v35 = vadd.f32 %v290_v27, %v289_v19  ;;  %v324_v36 = vrot.slane %v323_v28, 1  ;;  %v299_v37 = vadd.f32 %v298_v29, %v297_v21 }
  0x93   : > { %v333_v38 = vrot.slane %v332_v30, 1  ;;  %v307_v40 = vadd.f32 %v306_v32, %v305_v24  ;;  %v316_v41 = vadd.f32 %v315_v33, %v314_v25 }
  0x94   : > { %v280_v26 = vrot.slane %v279_v23, 2  ;;  %v325_v42 = vadd.f32 %v324_v36, %v323_v28 }
  0x95   : > { %v334_v44 = vadd.f32 %v333_v38, %v332_v30 }
  0x96   : > { %v281_v31 = vadd.f32 %v280_v26, %v279_v23 }
  0x98   : > { %v282_v34 = vrot.slane %v281_v31, 1 }
  0x9a   : > { %v283_v39 = vadd.f32 %v282_v34, %v281_v31 }
  0x9c   : > { %v336_v43 = vsel %vm335_vm4, %v283_v39, %v291_v35 }
  0x9d   : > { %v337_v45 = vsel %vm276_vm3, %v336_v43, %v299_v37 }
  0x9e   : > { %v339_v46 = vsel %vm338_vm5, %v337_v45, %v307_v40 }
  0x9f   : > { %v341_v47 = vsel %vm340_vm6, %v339_v46, %v316_v41 }
  0xa0   : > { %v343_v48 = vsel %vm342_vm7, %v341_v47, %v325_v42 }
  0xa1   : > { %v345_v49 = vsel %vm344_vm8, %v343_v48, %v334_v44 }
  0xa2   : > { %v347_v50 = vsel %vm346_vm9, %v345_v49, 0.0 }
  0xa3   : > { %348 = vst [vmem:[%s218_s26] sm:$0xff] %v347_v50 }
  0xa4   : > { %644 = shalt.err (!%p641_p9)
}
  0xa5   : > { %s645_s18 = scalar_lea.hbm %s917_s4, 128  ;;  %s649_s6 = scalar_lea.hbm %s966_s2, 256 }
  0xa6   : > { %p646_p1 = scmp.ne.s32.totalorder %s917_s4, %s645_s18  ;;  %p650_p4 = scmp.lt.u32.totalorder %s917_s4, %s966_s2 }
  0xa7   : > { %p651_p13 = scmp.lt.u32.totalorder %s649_s6, %s645_s18  ;;  %p653_p8 = scmp.lt.u32.totalorder %s645_s18, %s917_s4 }
  0xa8   : > { %p647_p5 = pnand %p646_p1, %p978_p0 }
  0xa9   : > { %p652_p3 = por %p651_p13, %p650_p4 }
  0xaa   : > { %p648_p2 = pneg %p647_p5 }
  0xab   : > { %p654_p11 = por %p653_p8, %p652_p3 }
  0xad   : > { %p655_p6 = pnand %p654_p11, %p648_p2 }
  0xaf   : > { %658 = shalt.err (!%p655_p6)
}
  0xb0   : > { %495 = dma.vmem_to_hbm [thread:$0]  (%p978_p0), %s912_s3, 128, %s917_s4, %s350_s25  }
  0xb1 PF: > { %s376_s19 = sand.u32 1, %s697_s9   ;;  %p979_p7 = scmp.ne.s32.totalorder %s972_s24, 0 }
  0xb2   : > { %p980_p10 = scmp.ge.s32.totalorder %s717_s14, 2  ;;  %s377_s21 = scalar_lea.sflag [#allocation4], %s376_s19 }
  0xb4   : > { %p505_p12 = pnand %p980_p10, %p979_p7 }
  0xb6   : > { %692 = dma.done.wait (!%p505_p12), %s377_s21, 128  }
  0xb7   : > { %694 = vsyncadd (!%p505_p12), %s377_s21, 4294967168  ;;  %s21_s14 = sadd.s32 1, %s717_s14   ;;  %s981_s9 = smov %s701_s10 }
  0xb8   : > { %p18_p9 = scmp.ge.s32.totalorder %s21_s14, 4   ;;  %s982_s10 = smov %s705_s11 }
  0xb9   : > { %s983_s11 = smov %s796_s23  ;;  %s984_s12 = smov %s713_s13 }
  0xba   : > { %s985_s13 = smov %s987_s17  ;;  %20 = sbr.rel (!%p18_p9) target bundleno = 8 (0x8), region = 88 }
  0xc1   :  { %382 = vsyncpa [#allocation3], 1 }
  0xc2   :  { %384 = vsyncpa [#allocation3 + $0x1], 1 }
  0xc3   :  { %385 = vsyncpa [#allocation6], 1 }
  0xc4   :  { %387 = vsyncpa [#allocation6 + $0x1], 1 }
  0xc5   :  { %388 = vsyncpa [#allocation4], 1 }
  0xc6   :  { %390 = vsyncpa [#allocation4 + $0x1], 1 }

</bundles_post_ra>
